<compile_context>
chip_gen: v5e
topology: v5e:2x2
jax: 0.10.0
libtpu: 0.0.40
codegen_flags: <defaults>
</compile_context>

<pallas_src>
import functools

import jax
import jax.numpy as jnp
from jax.experimental import pallas as pl
from jax.experimental.pallas import tpu as pltpu


TARGET_BLOCK_BYTES = 4 * 1024 * 1024   # ~4 MiB (f32-equivalent) input block
MIN_PALLAS_ELEMS = 1 << 18             # below ~1 MiB (f32) use plain XLA


def _cdiv(a, b):
    return (a + b - 1) // b


def _round_up(a, b):
    return _cdiv(a, b) * b


def _softplus(x):
    # numerically stable softplus: log(1 + exp(x)) = max(x,0) + log1p(exp(-|x|))
    return jnp.maximum(x, 0.0) + jnp.log1p(jnp.exp(-jnp.abs(x)))


def _gan_elem(x, gan_type, target_is_real, is_disc, real_val, fake_val):
    """Static (trace-time) selection of the per-element loss transform."""
    if gan_type == "vanilla":
        t = real_val if target_is_real else fake_val
        # BCEWithLogits with constant target t: max(x,0) - x*t + log1p(exp(-|x|))
        return jnp.maximum(x, 0.0) - x * t + jnp.log1p(jnp.exp(-jnp.abs(x)))
    elif gan_type == "lsgan":
        t = real_val if target_is_real else fake_val
        d = x - t
        return d * d
    elif gan_type == "L1":
        t = real_val if target_is_real else fake_val
        return jnp.abs(x - t)
    elif gan_type == "wgan":
        return -x if target_is_real else x
    elif gan_type == "wgan-logistic-ns":
        return _softplus(-x) if target_is_real else _softplus(x)
    elif gan_type == "hinge":
        if is_disc:
            xi = -x if target_is_real else x
            return jnp.maximum(1.0 + xi, 0.0)   # ReLU(1 + input)
        else:
            return -x
    else:
        raise NotImplementedError(f"GAN type {gan_type} is not implemented.")


def _gan_loss_sum_kernel(x_ref, o_ref, *, gan_type, target_is_real, is_disc,
                         real_val, fake_val, tm, n_cols, num_inner, num_tiles,
                         valid_rows_last):
    # Grid = (outer "parallel", inner "arbitrary" reduction).  The output block
    # index depends only on the outer axis, so it stays resident in VMEM across
    # the inner reduction and acts as the accumulator.
    o = pl.program_id(0)
    i = pl.program_id(1)

    @pl.when(i == 0)
    def _():
        o_ref[...] = jnp.zeros_like(o_ref)

    x = x_ref[...]
    # bf16 stays bf16 through the element-wise math (bf16 VPU/EUP on v6e/v7x);
    # other dtypes are widened to f32.  Accumulation is always f32.
    if x.dtype != jnp.bfloat16 and x.dtype != jnp.float32:
        x = x.astype(jnp.float32)

    elem = _gan_elem(x, gan_type, target_is_real, is_disc, real_val, fake_val)
    elem = elem.astype(jnp.float32)

    def _accumulate(e):
        # Pure VPU adds across groups of 8 sublane-rows; no XLU, no scalar RMW.
        o_ref[...] += jnp.sum(e.reshape(tm // 8, 8, n_cols), axis=0)

    if valid_rows_last == tm:
        # All blocks are full: no masking anywhere.
        _accumulate(elem)
    else:
        # Only the last block overhangs the array; mask it with a block-local
        # row iota (cheap, and immune to int32 overflow for huge inputs).
        lin = o * num_inner + i
        is_last = lin == (num_tiles - 1)

        @pl.when(jnp.logical_not(is_last))
        def _():
            _accumulate(elem)

        @pl.when(is_last)
        def _():
            row = jax.lax.broadcasted_iota(jnp.int32, (tm, n_cols), 0)
            _accumulate(jnp.where(row < valid_rows_last, elem, 0.0))


class GANLoss:
    """JAX/Pallas port of mmseg GANLoss (forward pass).

    gan_type in {'vanilla', 'lsgan', 'wgan', 'wgan-logistic-ns', 'hinge', 'L1'}.
    loss_weight is applied only for generators (is_disc=False), as in the original.
    """

    def __init__(self, gan_type, real_label_val=1.0, fake_label_val=0.0,
                 loss_weight=1.0, min_pallas_elems=MIN_PALLAS_ELEMS):
        if gan_type not in ("vanilla", "lsgan", "wgan", "wgan-logistic-ns",
                            "hinge", "L1"):
            raise NotImplementedError(f"GAN type {gan_type} is not implemented.")
        self.gan_type = gan_type
        self.real_label_val = float(real_label_val)
        self.fake_label_val = float(fake_label_val)
        self.loss_weight = float(loss_weight)
        self.min_pallas_elems = int(min_pallas_elems)

    @staticmethod
    def _plan(total):
        """Choose a copy-free lane-dense layout + tiling, or None for fallback."""
        n_cols = None
        for c in (512, 256, 128):
            if total % c == 0 and total // c >= 8:
                n_cols = c
                break
        if n_cols is None:
            return None
        rows = total // n_cols
        # ~4 MiB (f32-equivalent) blocks: amortizes the ~0.35 us/step grid
        # overhead while double-buffered input + in-kernel f32 intermediates
        # stay comfortably inside VMEM on all generations (incl. v7x 64 MiB).
        tm = (TARGET_BLOCK_BYTES // (n_cols * 4)) // 8 * 8
        tm = max(8, min(tm, _round_up(rows, 8)))
        num_tiles = _cdiv(rows, tm)
        # Split tiles across 2 "parallel" groups when it divides evenly so a
        # multi-TensorCore chip (v7x) can shard the outer axis; serial and
        # basically free on 1-TC v5e/v6e.
        if num_tiles >= 2 and num_tiles % 2 == 0:
            num_outer, num_inner = 2, num_tiles // 2
        else:
            num_outer, num_inner = 1, num_tiles
        valid_rows_last = rows - (num_tiles - 1) * tm
        return dict(n_cols=n_cols, rows=rows, tm=tm, num_tiles=num_tiles,
                    num_outer=num_outer, num_inner=num_inner,
                    valid_rows_last=valid_rows_last)

    def _pallas_sum(self, x, plan, target_is_real, is_disc):
        total = int(x.size)
        n_cols = plan["n_cols"]
        rows = plan["rows"]
        tm = plan["tm"]
        num_tiles = plan["num_tiles"]
        num_outer = plan["num_outer"]
        num_inner = plan["num_inner"]
        valid_rows_last = plan["valid_rows_last"]

        x2d = x.reshape(rows, n_cols)   # free (bitcast) for a contiguous array

        kernel = functools.partial(
            _gan_loss_sum_kernel,
            gan_type=self.gan_type,
            target_is_real=bool(target_is_real),
            is_disc=bool(is_disc),
            real_val=self.real_label_val,
            fake_val=self.fake_label_val,
            tm=tm, n_cols=n_cols,
            num_inner=num_inner, num_tiles=num_tiles,
            valid_rows_last=valid_rows_last,
        )

        transc = 2 * total if self.gan_type in ("vanilla",
                                                "wgan-logistic-ns") else 0
        cost = pl.CostEstimate(
            flops=5 * total,
            transcendentals=transc,
            bytes_accessed=total * x.dtype.itemsize + num_outer * 8 * n_cols * 4,
        )

        out = pl.pallas_call(
            kernel,
            out_shape=jax.ShapeDtypeStruct((num_outer * 8, n_cols), jnp.float32),
            grid_spec=pltpu.PrefetchScalarGridSpec(
                num_scalar_prefetch=0,
                grid=(num_outer, num_inner),
                in_specs=[pl.BlockSpec((tm, n_cols),
                                       lambda o, i: (o * num_inner + i, 0))],
                out_specs=pl.BlockSpec((8, n_cols), lambda o, i: (o, 0)),
            ),
            compiler_params=pltpu.CompilerParams(
                # TODO(synk): pltpu.CORE_PARALLEL / pl.core_map on the outer axis
                # would *guarantee* the 2-TensorCore split on v7x; "parallel" is
                # the portable choice across v5e/v6e/v7x.
                dimension_semantics=("parallel", "arbitrary"),
                vmem_limit_bytes=48 * 1024 * 1024,
            ),
            cost_estimate=cost,
        )(x2d)
        # Tiny final cross-lane/sublane reduction done once, outside the kernel.
        return jnp.sum(out)

    def __call__(self, input, target_is_real, is_disc=False):
        x = jnp.asarray(input)
        total = int(x.size)
        plan = None
        if total >= max(self.min_pallas_elems, 8 * 128):
            plan = self._plan(total)
        if plan is not None:
            s = self._pallas_sum(x, plan, target_is_real, is_disc)
            loss = s / jnp.float32(total)
        else:
            # Small / unaligned inputs: fixed pallas_call overhead (and any
            # pad/slice HBM copy) would dominate, so use plain XLA.
            # TODO(synk): element counts not divisible by 128 always take this path.
            xf = x.astype(jnp.float32)
            loss = jnp.mean(_gan_elem(xf, self.gan_type, bool(target_is_real),
                                      bool(is_disc), self.real_label_val,
                                      self.fake_label_val))
        if not is_disc:
            loss = loss * jnp.float32(self.loss_weight)
        return loss


def _ref_loss(x, gan_type, target_is_real, is_disc, real_val, fake_val,
              loss_weight):
    """Pure-JAX reference for verification."""
    xf = x.astype(jnp.float32)
    elem = _gan_elem(xf, gan_type, bool(target_is_real), bool(is_disc),
                     real_val, fake_val)
    loss = jnp.mean(elem)
    if not is_disc:
        loss = loss * loss_weight
    return loss


if __name__ == "__main__":
    configs = [
        ("vanilla", True, False), ("vanilla", False, True),
        ("lsgan", True, False), ("lsgan", False, True),
        ("wgan", True, False), ("wgan", False, True),
        ("wgan-logistic-ns", True, False), ("wgan-logistic-ns", False, True),
        ("hinge", True, True), ("hinge", False, True), ("hinge", True, False),
        ("L1", True, False), ("L1", False, True),
    ]

    ok = True

    def check(x, gan_type, tir, disc, mod, rtol=1e-5, atol=1e-5):
        global ok
        out = jax.block_until_ready(mod(x, tir, is_disc=disc))
        ref = jax.block_until_ready(
            _ref_loss(x, gan_type, tir, disc, mod.real_label_val,
                      mod.fake_label_val, mod.loss_weight))
        if not jnp.allclose(out, ref, rtol=rtol, atol=atol):
            ok = False
            print(f"MISMATCH {gan_type} real={tir} disc={disc} "
                  f"shape={tuple(x.shape)} dtype={x.dtype}: {out} vs {ref}")

    key = jax.random.PRNGKey(0)

    # 1) Canonical small input (2,4,16,16); force the Pallas path for all gan
    #    types (min_pallas_elems=0) so every kernel variant is exercised.
    x_small = jax.random.normal(key, (2, 4, 16, 16), dtype=jnp.float32)
    for gan_type, tir, disc in configs:
        mod = GANLoss(gan_type, real_label_val=1.0, fake_label_val=0.0,
                      loss_weight=2.0, min_pallas_elems=0)
        check(x_small, gan_type, tir, disc, mod)

    # 2) Same small input through the default small-input fast path (pure XLA).
    check(x_small, "vanilla", True, False, GANLoss("vanilla", loss_weight=2.0))

    # 3) Larger f32 inputs exercising multi-tile grids:
    #    a) even tile count -> outer "parallel" split of 2 (no mask),
    #    b) odd tile count + partial last block -> last-block row mask.
    keys = jax.random.split(jax.random.PRNGKey(1), 3)
    x_a = jax.random.normal(keys[0], (4, 4, 512, 512), dtype=jnp.float32)
    for gan_type, tir, disc in [("vanilla", True, False), ("hinge", False, True)]:
        check(x_a, gan_type, tir, disc, GANLoss(gan_type, loss_weight=2.0),
              rtol=1e-4, atol=1e-5)

    x_b = jax.random.normal(keys[1], (3, 4, 384, 512), dtype=jnp.float32)
    for gan_type, tir, disc in [("lsgan", False, True),
                                ("wgan-logistic-ns", True, False)]:
        check(x_b, gan_type, tir, disc, GANLoss(gan_type, loss_weight=2.0),
              rtol=1e-4, atol=1e-5)

    # 4) bf16 input: element-wise math stays bf16, accumulation in f32.
    x_c = jax.random.normal(keys[2], (4, 4, 512, 512), dtype=jnp.bfloat16)
    check(x_c, "vanilla", True, False, GANLoss("vanilla", loss_weight=2.0),
          rtol=2e-2, atol=2e-2)

    if ok:
        print("KERNEL_OK")
</pallas_src>

<mosaic_0001>
module attributes {stable_mosaic.version = 11 : i64} {
  func.func @_gan_loss_sum_kernel(%arg0: i32, %arg1: i32, %arg2: memref<8x256xf32, #tpu.memory_space<vmem>>, %arg3: memref<8x256xf32, #tpu.memory_space<vmem>>) attributes {dimension_semantics = [#tpu.dimension_semantics<parallel>, #tpu.dimension_semantics<arbitrary>], iteration_bounds = array<i64: 1, 1>, scalar_prefetch = 0 : i64, scratch_operands = 0 : i64, tpu.core_type = #tpu.core_type<tc>, window_params = [{transform_indices = @transform_0, window_bounds = array<i64: 8, 256>}, {transform_indices = @transform_1, window_bounds = array<i64: 8, 256>}]} {
    %c0_i32 = arith.constant 0 : i32
    %0 = arith.cmpi eq, %arg1, %c0_i32 : i32
    %1 = arith.extui %0 : i1 to i32
    %c0_i32_0 = arith.constant 0 : i32
    %2 = arith.cmpi ne, %1, %c0_i32_0 : i32
    scf.if %2 {
      %cst_9 = arith.constant 0.000000e+00 : f32
      %20 = vector.broadcast %cst_9 : f32 to vector<8x256xf32>
      %c0_10 = arith.constant 0 : index
      %c0_11 = arith.constant 0 : index
      %21 = vector.load %arg3[%c0_10, %c0_11] : memref<8x256xf32, #tpu.memory_space<vmem>>, vector<8x256xf32>
      tpu.vector_store %arg3[%c0_10, %c0_11], %20 {strides = array<i32>} : memref<8x256xf32, #tpu.memory_space<vmem>>, vector<8x256xf32>,
    } else {
    }
    %c0 = arith.constant 0 : index
    %c0_1 = arith.constant 0 : index
    %3 = vector.load %arg2[%c0, %c0_1] : memref<8x256xf32, #tpu.memory_space<vmem>>, vector<8x256xf32>
    %cst = arith.constant 0.000000e+00 : f32
    %4 = vector.broadcast %cst : f32 to vector<8x256xf32>
    %5 = arith.maximumf %3, %4 : vector<8x256xf32>
    %cst_2 = arith.constant 1.000000e+00 : f32
    %6 = vector.broadcast %cst_2 : f32 to vector<8x256xf32>
    %7 = arith.mulf %3, %6 : vector<8x256xf32>
    %8 = arith.subf %5, %7 : vector<8x256xf32>
    %9 = math.absf %3 : vector<8x256xf32>
    %cst_3 = arith.constant 0.000000e+00 : f32
    %10 = vector.broadcast %cst_3 : f32 to vector<8x256xf32>
    %11 = arith.subf %10, %9 : vector<8x256xf32>
    %12 = math.exp %11 : vector<8x256xf32>
    %13 = math.log1p %12 : vector<8x256xf32>
    %14 = arith.addf %8, %13 : vector<8x256xf32>
    %c0_4 = arith.constant 0 : index
    %c0_5 = arith.constant 0 : index
    %15 = vector.load %arg3[%c0_4, %c0_5] : memref<8x256xf32, #tpu.memory_space<vmem>>, vector<8x256xf32>
    %16 = vector.shape_cast %14 : vector<8x256xf32> to vector<1x8x256xf32>
    %cst_6 = arith.constant dense<0.000000e+00> : vector<8x256xf32>
    %17 = vector.multi_reduction <add>, %16, %cst_6 [0] : vector<1x8x256xf32> to vector<8x256xf32>
    %18 = arith.addf %15, %17 : vector<8x256xf32>
    %c0_7 = arith.constant 0 : index
    %c0_8 = arith.constant 0 : index
    %19 = vector.load %arg3[%c0_7, %c0_8] : memref<8x256xf32, #tpu.memory_space<vmem>>, vector<8x256xf32>
    tpu.vector_store %arg3[%c0_7, %c0_8], %18 {strides = array<i32>} : memref<8x256xf32, #tpu.memory_space<vmem>>, vector<8x256xf32>,
    return
  }
  func.func @transform_0(%arg0: i32, %arg1: i32) -> (i32, i32) {
    %c1_i32 = arith.constant 1 : i32
    %0 = arith.muli %arg0, %c1_i32 : i32
    %1 = arith.addi %0, %arg1 : i32
    %c0_i32 = arith.constant 0 : i32
    %c0_i32_0 = arith.constant 0 : i32
    return %1, %c0_i32 : i32, i32
  }
  func.func @transform_1(%arg0: i32, %arg1: i32) -> (i32, i32) {
    %c0_i32 = arith.constant 0 : i32
    %c0_i32_0 = arith.constant 0 : i32
    return %arg0, %c0_i32 : i32, i32
  }
}

</mosaic_0001>

<bundles_post_ra>
// kernel: tpu_custom_call.1
= control target key start
LH: loop header
LB: loop body
LE: loop exit
PB: predicated region body
PF: predicated region fallthrough
CT: control target
= control target key end

     0   :  { %6 = vsyncpa [#allocation3], 0  ;;  %s174_s0 = inlined_call_operand.hbm [shape: f32[8,256], index: 0, kind: input, shape index: {}]   ;;  %s175_s1 = inlined_call_operand.hbm [shape: f32[8,256], index: 1, kind: output, shape index: {}]  }
   0x1   :  { %7 = vsyncpa [#allocation4], 0  ;;  %s17_s8 = sshll.u32 %s174_s0, 4  ;;  %s156_s9 = smov [#allocation2]   ;;  %s18_s8 = int_to_ptr.hbm [resolvable:$true] %s17_s8 }
   0x2   :  { %s19_s10 = sshll.u32 %s156_s9, 4  ;;  %s20_s10 = int_to_ptr.vmem [resolvable:$true] %s19_s10 }
   0x3   :  { %22 = dma.hbm_to_vmem [thread:$0]  %s18_s8, 256, %s20_s10, [#allocation3]  }
   0x4   :  { %152 = dma.done.wait [#allocation3], 256  }
   0x5   :  { %153 = vsyncadd [#allocation3], 4294967040  ;;  %v34_v0 = vld [vmem:[#allocation2] sm:$0xff]  ;;  %v35_v1 = vld [vmem:[#allocation2 + $0x8] sm:$0xff]  ;;  %s157_s0 = smov [#allocation5]   ;;  %s83_s14 = sshll.u32 %s175_s1, 4  ;;  %s84_s14 = int_to_ptr.hbm [resolvable:$true] %s83_s14 }
   0x6   :  { %v40_v2 = vand.u32 2147483647, %v34_v0  ;;  %v41_v3 = vand.u32 2147483647, %v35_v1  ;;  %v36_v15 = vmax.f32 %v34_v0, 0.0  ;;  %v37_v18 = vmax.f32 %v35_v1, 0.0 }
   0x7   :  { %s81_s11 = sshll.u32 %s157_s0, 4  ;;  %s82_s11 = int_to_ptr.vmem [resolvable:$true] %s81_s11 }
   0x8   :  { %v42_v4 = vsub.f32 0.0, %v40_v2  ;;  %v43_v5 = vsub.f32 0.0, %v41_v3  ;;  %v38_v22 = vsub.f32 %v36_v15, %v34_v0  ;;  %v39_v26 = vsub.f32 %v37_v18, %v35_v1 }
   0xa   :  { %v44_v6 = vmul.f32 1.442695, %v42_v4  ;;  %v46_v7 = vmul.f32 1.442695, %v43_v5 }
   0xc   :  { %96 = vpow2.f32 %v44_v6 }
   0xd   :  { %98 = vpow2.f32 %v46_v7 }
  0x12   :  { %v97_v8 = vpop.eup %96 }
  0x13   :  { %v99_v9 = vpop.eup %98  ;;  %v48_v10 = vadd.f32 1.0, %v97_v8  ;;  %v51_v11 = vmul.f32 -0.5, %v97_v8  ;;  %v54_v16 = vand.u32 2147483647, %v97_v8 }
  0x14   :  { %v57_v12 = vadd.f32 1.0, %v99_v9  ;;  %v60_v13 = vmul.f32 -0.5, %v99_v9  ;;  %v63_v19 = vand.u32 2147483647, %v99_v9 }
  0x15   :  { %100 = vlog2.f32 %v48_v10  ;;  %v52_v14 = vadd.f32 1.0, %v51_v11  ;;  %vm55_vm0 = vcmp.lt.f32.partialorder %v54_v16, 0.0004427343 }
  0x16   :  { %102 = vlog2.f32 %v57_v12  ;;  %v61_v17 = vadd.f32 1.0, %v60_v13  ;;  %vm64_vm1 = vcmp.lt.f32.partialorder %v63_v19, 0.0004427343 }
  0x17   :  { %v53_v20 = vmul.f32 %v97_v8, %v52_v14 }
  0x18   :  { %v62_v23 = vmul.f32 %v99_v9, %v61_v17 }
  0x1b   :  { %v101_v21 = vpop.eup %100 }
  0x1c   :  { %v103_v24 = vpop.eup %102  ;;  %v50_v25 = vmul.f32 0.6931472, %v101_v21 }
  0x1d   :  { %v59_v27 = vmul.f32 0.6931472, %v103_v24 }
  0x1e   :  { %v56_v28 = vsel %vm55_vm0, %v53_v20, %v50_v25 }
  0x1f   :  { %v66_v29 = vadd.f32 %v56_v28, %v38_v22  ;;  %v65_v30 = vsel %vm64_vm1, %v62_v23, %v59_v27 }
  0x20   :  { %v67_v31 = vadd.f32 %v65_v30, %v39_v26 }
  0x21   :  { %74 = vst [vmem:[#allocation5] sm:$0xff] %v66_v29 }
  0x22   :  { %75 = vst [vmem:[#allocation5 + $0x8] sm:$0xff] %v67_v31 }
  0x23   :  { %86 = dma.vmem_to_hbm [thread:$0]  %s82_s11, 256, %s84_s14, [#allocation4]  }
  0x24   :  { %154 = dma.done.wait [#allocation4], 256  }
  0x25   :  { %155 = vsyncadd [#allocation4], 4294967040 }
  0x26   :  { %91 = vsyncpa [#allocation3], 1 }
  0x27   :  { %92 = vsyncpa [#allocation4], 1 }

</bundles_post_ra>
